<compile_context>
chip_gen: v5e
topology: v5e:2x2
jax: 0.10.0
libtpu: 0.0.40
codegen_flags: <defaults>
</compile_context>

<pallas_src>
import jax
import jax.numpy as jnp
from jax.experimental import pallas as pl
from jax.experimental.pallas import tpu as pltpu


def _copy_kernel(x_ref, o_ref):
    # AutoencoderFC.forward is nn.Sequential() == identity: a pure copy.
    o_ref[...] = x_ref[...]


_LANE = 128
_MAX_LANES = 2048                        # lane-dense but keeps rows tileable
_TARGET_BLOCK_BYTES = 4 * 1024 * 1024    # ~4 MiB/block -> ~16 MiB resident with
                                         # 2-deep in+out buffers (fits v7x/v5e)


def _pick_lanes(total):
    """Largest multiple of 128 that divides `total`, capped at _MAX_LANES."""
    best = 0
    lanes = _LANE
    cap = min(total, _MAX_LANES)
    while lanes <= cap:
        if total % lanes == 0:
            best = lanes
        lanes += _LANE
    return best


def autoencoder_fc_forward(x):
    """Pallas implementation of AutoencoderFC.forward (identity)."""
    orig_shape = x.shape
    orig_dtype = x.dtype
    total = x.size

    lanes = _pick_lanes(total)

    if lanes == 0:
        # Element count not a multiple of 128: single full-array block fallback
        # (only hit for odd-sized toy inputs; partial-lane stores are masked).
        x2d = x.reshape(1, total)
        out2d = pl.pallas_call(
            _copy_kernel,
            out_shape=jax.ShapeDtypeStruct((1, total), orig_dtype),
            grid=(1,),
            in_specs=[pl.BlockSpec((1, total), lambda i: (0, 0))],
            out_specs=pl.BlockSpec((1, total), lambda i: (0, 0)),
        )(x2d)
        return out2d.reshape(orig_shape)

    rows = total // lanes
    itemsize = jnp.dtype(orig_dtype).itemsize

    # Row-tile so one block is ~<= 4 MiB; multiple of 8 sublanes unless the
    # whole array already fits in a single block.
    tr = max(8, _TARGET_BLOCK_BYTES // (lanes * itemsize))
    tr = (tr // 8) * 8
    if tr >= rows:
        tr = rows            # full-array block for small inputs
    grid_rows = pl.cdiv(rows, tr)

    x2d = x.reshape(rows, lanes)

    out2d = pl.pallas_call(
        _copy_kernel,
        out_shape=jax.ShapeDtypeStruct((rows, lanes), orig_dtype),
        grid=(grid_rows,),
        in_specs=[pl.BlockSpec((tr, lanes), lambda i: (i, 0))],
        out_specs=pl.BlockSpec((tr, lanes), lambda i: (i, 0)),
        compiler_params=pltpu.CompilerParams(
            # Row blocks are independent: "parallel" lets v7x shard the copy
            # across both TensorCores; no-op on single-core v5e/v6e.
            dimension_semantics=("parallel",),
        ),
    )(x2d)

    return out2d.reshape(orig_shape)


if __name__ == "__main__":
    key = jax.random.PRNGKey(0)
    # Small NCHW input consistent with an autoencoder-style module.
    x = jax.random.normal(key, (2, 4, 16, 16), dtype=jnp.float32)

    y = autoencoder_fc_forward(x)
    jax.block_until_ready(y)

    # Identity semantics check (bit-exact copy).
    assert y.shape == x.shape and y.dtype == x.dtype
    assert bool(jnp.allclose(y, x)), "identity forward mismatch"

    print("KERNEL_OK")
</pallas_src>

<mosaic_0001>
module attributes {stable_mosaic.version = 11 : i64} {
  func.func @_copy_kernel(%arg0: i32, %arg1: memref<1x2048xf32, #tpu.memory_space<vmem>>, %arg2: memref<1x2048xf32, #tpu.memory_space<vmem>>) attributes {dimension_semantics = [#tpu.dimension_semantics<parallel>], iteration_bounds = array<i64: 1>, scalar_prefetch = 0 : i64, scratch_operands = 0 : i64, tpu.core_type = #tpu.core_type<tc>, window_params = [{transform_indices = @transform_0, window_bounds = array<i64: 1, 2048>}, {transform_indices = @transform_1, window_bounds = array<i64: 1, 2048>}]} {
    %c0 = arith.constant 0 : index
    %c0_0 = arith.constant 0 : index
    %0 = vector.load %arg1[%c0, %c0_0] : memref<1x2048xf32, #tpu.memory_space<vmem>>, vector<1x2048xf32>
    %c0_1 = arith.constant 0 : index
    %c0_2 = arith.constant 0 : index
    %1 = vector.load %arg2[%c0_1, %c0_2] : memref<1x2048xf32, #tpu.memory_space<vmem>>, vector<1x2048xf32>
    tpu.vector_store %arg2[%c0_1, %c0_2], %0 {strides = array<i32>} : memref<1x2048xf32, #tpu.memory_space<vmem>>, vector<1x2048xf32>,
    return
  }
  func.func @transform_0(%arg0: i32) -> (i32, i32) {
    %c0_i32 = arith.constant 0 : i32
    %c0_i32_0 = arith.constant 0 : i32
    return %arg0, %c0_i32 : i32, i32
  }
  func.func @transform_1(%arg0: i32) -> (i32, i32) {
    %c0_i32 = arith.constant 0 : i32
    %c0_i32_0 = arith.constant 0 : i32
    return %arg0, %c0_i32 : i32, i32
  }
}

</mosaic_0001>

<bundles_post_ra>
// kernel: tpu_custom_call.1
= control target key start
LH: loop header
LB: loop body
LE: loop exit
PB: predicated region body
PF: predicated region fallthrough
CT: control target
= control target key end

     0   :  { %6 = vsyncpa [#allocation3], 0  ;;  %s116_s0 = inlined_call_operand.hbm [shape: f32[1,2048], index: 0, kind: input, shape index: {}]   ;;  %s117_s1 = inlined_call_operand.hbm [shape: f32[1,2048], index: 1, kind: output, shape index: {}]  }
   0x1   :  { %7 = vsyncpa [#allocation4], 0  ;;  %s13_s8 = sshll.u32 %s116_s0, 4  ;;  %s98_s9 = smov [#allocation2]   ;;  %s14_s8 = int_to_ptr.hbm [resolvable:$true] %s13_s8 }
   0x2   :  { %s15_s10 = sshll.u32 %s98_s9, 4  ;;  %s16_s10 = int_to_ptr.vmem [resolvable:$true] %s15_s10 }
   0x3   :  { %18 = dma.hbm_to_vmem [thread:$0]  %s14_s8, 256, %s16_s10, [#allocation3]  }
   0x4   :  { %94 = dma.done.wait [#allocation3], 256  }
   0x5   :  { %95 = vsyncadd [#allocation3], 4294967040  ;;  %s99_s11 = smov [#allocation5]   ;;  %s34_s15 = sshll.u32 %s117_s1, 4  ;;  %v23_v0 = vld [vmem:[#allocation2] sm:$0xff]  ;;  %v24_v1 = vld [vmem:[#allocation2 + $0x8] sm:$0xff]  ;;  %s35_s15 = int_to_ptr.hbm [resolvable:$true] %s34_s15 }
   0x6   :  { %s32_s12 = sshll.u32 %s99_s11, 4  ;;  %25 = vst [vmem:[#allocation5] sm:$0xff] %v23_v0  ;;  %s33_s12 = int_to_ptr.vmem [resolvable:$true] %s32_s12 }
   0x7   :  { %26 = vst [vmem:[#allocation5 + $0x8] sm:$0xff] %v24_v1 }
   0x8   :  { %37 = dma.vmem_to_hbm [thread:$0]  %s33_s12, 256, %s35_s15, [#allocation4]  }
   0x9   :  { %96 = dma.done.wait [#allocation4], 256  }
   0xa   :  { %97 = vsyncadd [#allocation4], 4294967040 }
   0xb   :  { %42 = vsyncpa [#allocation3], 1 }
   0xc   :  { %43 = vsyncpa [#allocation4], 1 }

</bundles_post_ra>
